<compile_context>
chip_gen: v5e
topology: v5e:2x2
jax: 0.10.0
libtpu: 0.0.40
codegen_flags: <defaults>
</compile_context>

<pallas_src>
import functools

import jax
import jax.numpy as jnp
from jax import lax
from jax.experimental import pallas as pl
from jax.experimental.pallas import tpu as pltpu


def _bottleneck_kernel(x_ref, w1_ref, o1_ref, w2_ref, o2_ref, mask_ref, out_ref,
                       *, H, W):
    # x_ref:    (1, CinP, LP)      bf16 flattened zero-padded input image
    # w1_ref:   (3, Cout, 3*CinP)  bf16 conv1 weights (BN1 folded), split by dy
    # o1_ref:   (Cout, 1)          f32 folded conv1 bias + BN1 offset
    # w2_ref:   (3, Cout, 3*Cout)  bf16 conv2 weights (BN2 folded), split by dy
    # o2_ref:   (Cout, 1)          f32 folded conv2 bias + BN2 offset
    # mask_ref: (1, WIDE)          f32, 1.0 on valid cols, 0.0 on 2 junk cols/row
    # out_ref:  (1, Cout, WIDEP)   f32 output in "wide" row layout, lane-padded
    Wp = W + 2
    WIDE = H * Wp
    Cout = out_ref.shape[1]
    WIDEP = out_ref.shape[2]
    LP = x_ref.shape[2]
    CinP = x_ref.shape[1]

    xf = x_ref[0]                                               # (CinP, LP) bf16

    # ---- conv1 + bn1 : 3 accumulating K=3*CinP contractions over dy ----
    acc1 = jnp.zeros((Cout, WIDE), jnp.float32)
    for dy in range(3):
        cols = jnp.concatenate(
            [xf[:, dy * Wp + dx: dy * Wp + dx + WIDE] for dx in range(3)],
            axis=0)                                             # (3*CinP, WIDE) bf16
        acc1 = acc1 + jnp.dot(w1_ref[dy], cols,
                              preferred_element_type=jnp.float32)
    # relu; zero the 2 junk columns per wide row.  dropout(p=0.3) is identity
    # in eval mode.
    y1 = jnp.maximum(acc1 + o1_ref[...], 0.0) * mask_ref[...]   # (Cout, WIDE) f32

    # re-embed conv1 output as a zero-padded flat image (bf16 for the MXU)
    y1b = y1.astype(jnp.bfloat16)
    lead = jnp.zeros((Cout, Wp + 1), jnp.bfloat16)              # top pad row + left pad
    tail = jnp.zeros((Cout, LP - (Wp + 1) - WIDE), jnp.bfloat16)
    y1p = jnp.concatenate([lead, y1b, tail], axis=1)            # (Cout, LP) bf16

    # ---- conv2 + bn2 ----
    acc2 = jnp.zeros((Cout, WIDE), jnp.float32)
    for dy in range(3):
        cols = jnp.concatenate(
            [y1p[:, dy * Wp + dx: dy * Wp + dx + WIDE] for dx in range(3)],
            axis=0)                                             # (3*Cout, WIDE) bf16
        acc2 = acc2 + jnp.dot(w2_ref[dy], cols,
                              preferred_element_type=jnp.float32)
    y2 = jnp.maximum(acc2 + o2_ref[...], 0.0)                   # (Cout, WIDE) f32

    # lane-pad to WIDEP (multiple of 128) so the output store is unmasked vst
    if WIDEP > WIDE:
        y2 = jnp.concatenate(
            [y2, jnp.zeros((Cout, WIDEP - WIDE), jnp.float32)], axis=1)
    out_ref[0] = y2.astype(out_ref.dtype)


def bottleneck_block_pallas(x_nchw, p, eps=1e-5):
    """x_nchw: (N, Cin, H, W) float32.  Returns (N, Cout, H, W), eval-mode."""
    N, Cin, H, W = x_nchw.shape
    Cout = p['w1'].shape[0]
    Wp = W + 2
    WIDE = H * Wp                          # wide row layout: W valid + 2 junk per row
    WIDEP = ((WIDE + 127) // 128) * 128    # lane-padded output width
    CinP = -(-Cin // 8) * 8                # sublane-aligned input channels
    LP = (H + 3) * Wp                      # padded flat length, includes tap slack
    assert LP >= (H + 2) * Wp + 2

    # one fused pad: channel pad -> CinP, 3x3 'same' halo, +1 extra bottom row
    # (the tap-offset slack), then a free reshape to the flat layout.
    xp = jnp.pad(x_nchw.astype(jnp.bfloat16),
                 ((0, 0), (0, CinP - Cin), (1, 2), (1, 1)))
    xp = xp.reshape(N, CinP, LP)

    f32 = jnp.float32
    # fold BatchNorm (running stats) + conv bias into weights / offsets
    s1 = (p['g1'] / jnp.sqrt(p['rv1'] + eps)).astype(f32)
    s2 = (p['g2'] / jnp.sqrt(p['rv2'] + eps)).astype(f32)

    w1t = jnp.transpose(p['w1'], (2, 3, 0, 1))                        # (3,3,Cout,Cin)
    w1t = jnp.pad(w1t, ((0, 0), (0, 0), (0, 0), (0, CinP - Cin)))
    w1t = w1t * s1[None, None, :, None]
    w1b = jnp.transpose(w1t, (0, 2, 1, 3)).reshape(3, Cout, 3 * CinP)
    w1b = w1b.astype(jnp.bfloat16)

    w2t = jnp.transpose(p['w2'], (2, 3, 0, 1)) * s2[None, None, :, None]
    w2b = jnp.transpose(w2t, (0, 2, 1, 3)).reshape(3, Cout, 3 * Cout)
    w2b = w2b.astype(jnp.bfloat16)

    o1 = (s1 * (p['b1'] - p['rm1']) + p['be1']).reshape(Cout, 1).astype(f32)
    o2 = (s2 * (p['b2'] - p['rm2']) + p['be2']).reshape(Cout, 1).astype(f32)

    # 0/1 mask zeroing the 2 junk columns of each wide row
    col = jnp.arange(WIDE, dtype=jnp.int32) % Wp
    mask = (col < W).astype(f32).reshape(1, WIDE)

    kernel = functools.partial(_bottleneck_kernel, H=H, W=W)

    grid_spec = pltpu.PrefetchScalarGridSpec(
        num_scalar_prefetch=0,
        grid=(N,),
        in_specs=[
            pl.BlockSpec((1, CinP, LP), lambda n: (n, 0, 0)),
            pl.BlockSpec((3, Cout, 3 * CinP), lambda n: (0, 0, 0)),
            pl.BlockSpec((Cout, 1), lambda n: (0, 0)),
            pl.BlockSpec((3, Cout, 3 * Cout), lambda n: (0, 0, 0)),
            pl.BlockSpec((Cout, 1), lambda n: (0, 0)),
            pl.BlockSpec((1, WIDE), lambda n: (0, 0)),
        ],
        out_specs=pl.BlockSpec((1, Cout, WIDEP), lambda n: (n, 0, 0)),
    )

    # VMEM budget: double-buffered blocks + in-kernel temporaries (im2col
    # slabs, f32 accumulators, y1p), clamped to a fraction of physical VMEM.
    bytes_blocks = (2 * CinP * LP                                  # x (bf16)
                    + 2 * (3 * Cout * 3 * CinP + 3 * Cout * 3 * Cout)  # weights
                    + 4 * (2 * Cout + WIDE)                        # offsets + mask
                    + 4 * Cout * WIDEP)                            # output (f32)
    bytes_tmp = (2 * 3 * max(CinP, Cout) * WIDE                    # one im2col slab
                 + 4 * 2 * Cout * WIDE                             # two f32 accumulators
                 + 2 * Cout * LP)                                  # y1p (bf16)
    budget = 2 * bytes_blocks + 2 * bytes_tmp
    try:
        vmem_cap = getattr(pltpu.get_tpu_info(), 'vmem_capacity_bytes', 64 * 2**20)
    except Exception:
        vmem_cap = 64 * 2**20                                      # v7x lower bound
    vmem_limit = int(min(max(budget, 8 * 2**20), 0.75 * vmem_cap))

    wide = pl.pallas_call(
        kernel,
        out_shape=jax.ShapeDtypeStruct((N, Cout, WIDEP), jnp.float32),
        grid_spec=grid_spec,
        compiler_params=pltpu.CompilerParams(
            dimension_semantics=("parallel",),
            vmem_limit_bytes=vmem_limit),
    )(xp, w1b, o1, w2b, o2, mask)

    # drop lane padding + the 2 junk columns per row -> (N, Cout, H, W)
    return wide[:, :, :WIDE].reshape(N, Cout, H, Wp)[:, :, :, :W]


def bottleneck_block_reference(x_nchw, p, eps=1e-5):
    """Pure-JAX f32 reference (eval-mode) for correctness checking."""
    x = jnp.transpose(x_nchw, (0, 2, 3, 1))
    dn = ('NHWC', 'HWIO', 'NHWC')
    w1 = jnp.transpose(p['w1'], (2, 3, 1, 0))
    w2 = jnp.transpose(p['w2'], (2, 3, 1, 0))
    y = lax.conv_general_dilated(x, w1, (1, 1), 'SAME', dimension_numbers=dn) + p['b1']
    s1 = p['g1'] / jnp.sqrt(p['rv1'] + eps)
    y = jnp.maximum(y * s1 + (p['be1'] - p['rm1'] * s1), 0.0)
    y = lax.conv_general_dilated(y, w2, (1, 1), 'SAME', dimension_numbers=dn) + p['b2']
    s2 = p['g2'] / jnp.sqrt(p['rv2'] + eps)
    y = jnp.maximum(y * s2 + (p['be2'] - p['rm2'] * s2), 0.0)
    return jnp.transpose(y, (0, 3, 1, 2))


if __name__ == "__main__":
    in_c, out_c = 4, 8
    N, H, W = 2, 16, 16

    ks = jax.random.split(jax.random.PRNGKey(0), 13)
    params = {
        'w1': 0.1 * jax.random.normal(ks[0], (out_c, in_c, 3, 3), jnp.float32),
        'b1': 0.1 * jax.random.normal(ks[1], (out_c,), jnp.float32),
        'g1': 1.0 + 0.1 * jax.random.normal(ks[2], (out_c,), jnp.float32),
        'be1': 0.1 * jax.random.normal(ks[3], (out_c,), jnp.float32),
        'rm1': 0.1 * jax.random.normal(ks[4], (out_c,), jnp.float32),
        'rv1': 0.5 + jnp.abs(jax.random.normal(ks[5], (out_c,), jnp.float32)),
        'w2': 0.1 * jax.random.normal(ks[6], (out_c, out_c, 3, 3), jnp.float32),
        'b2': 0.1 * jax.random.normal(ks[7], (out_c,), jnp.float32),
        'g2': 1.0 + 0.1 * jax.random.normal(ks[8], (out_c,), jnp.float32),
        'be2': 0.1 * jax.random.normal(ks[9], (out_c,), jnp.float32),
        'rm2': 0.1 * jax.random.normal(ks[10], (out_c,), jnp.float32),
        'rv2': 0.5 + jnp.abs(jax.random.normal(ks[11], (out_c,), jnp.float32)),
    }
    x = jax.random.normal(ks[12], (N, in_c, H, W), jnp.float32)

    out = bottleneck_block_pallas(x, params)
    jax.block_until_ready(out)

    ref = bottleneck_block_reference(x, params)
    assert out.shape == (N, out_c, H, W)
    # bf16 MXU inputs (f32 accumulation / epilogue) -> tolerance reflects bf16
    # input rounding; measured error is well inside this bound.
    assert jnp.allclose(out, ref, atol=2e-2, rtol=2e-2)

    print("KERNEL_OK")
</pallas_src>

<mosaic_0001>
module attributes {stable_mosaic.version = 11 : i64} {
  func.func @_bottleneck_kernel(%arg0: i32, %arg1: memref<1x8x342xbf16, #tpu.memory_space<vmem>>, %arg2: memref<3x8x24xbf16, #tpu.memory_space<vmem>>, %arg3: memref<8x1xf32, #tpu.memory_space<vmem>>, %arg4: memref<3x8x24xbf16, #tpu.memory_space<vmem>>, %arg5: memref<8x1xf32, #tpu.memory_space<vmem>>, %arg6: memref<1x288xf32, #tpu.memory_space<vmem>>, %arg7: memref<1x8x384xf32, #tpu.memory_space<vmem>>) attributes {dimension_semantics = [#tpu.dimension_semantics<parallel>], iteration_bounds = array<i64: 2>, scalar_prefetch = 0 : i64, scratch_operands = 0 : i64, tpu.core_type = #tpu.core_type<tc>, window_params = [{transform_indices = @transform_0, window_bounds = array<i64: 1, 8, 342>}, {pipeline_mode = #tpu.pipeline_mode<synchronous>, transform_indices = @transform_1, window_bounds = array<i64: 3, 8, 24>}, {pipeline_mode = #tpu.pipeline_mode<synchronous>, transform_indices = @transform_2, window_bounds = array<i64: 8, 1>}, {pipeline_mode = #tpu.pipeline_mode<synchronous>, transform_indices = @transform_3, window_bounds = array<i64: 3, 8, 24>}, {pipeline_mode = #tpu.pipeline_mode<synchronous>, transform_indices = @transform_4, window_bounds = array<i64: 8, 1>}, {pipeline_mode = #tpu.pipeline_mode<synchronous>, transform_indices = @transform_5, window_bounds = array<i64: 1, 288>}, {transform_indices = @transform_6, window_bounds = array<i64: 1, 8, 384>}]} {
    %c0 = arith.constant 0 : index
    %c0_0 = arith.constant 0 : index
    %c0_1 = arith.constant 0 : index
    %0 = vector.load %arg1[%c0, %c0_0, %c0_1] : memref<1x8x342xbf16, #tpu.memory_space<vmem>>, vector<1x8x342xbf16>
    %1 = vector.shape_cast %0 : vector<1x8x342xbf16> to vector<8x342xbf16>
    %cst = arith.constant 0.000000e+00 : f32
    %2 = vector.broadcast %cst : f32 to vector<8x288xf32>
    %3 = vector.extract_strided_slice %1 {offsets = [0, 0], sizes = [8, 288], strides = [1, 1]} : vector<8x342xbf16> to vector<8x288xbf16>
    %4 = vector.extract_strided_slice %1 {offsets = [0, 1], sizes = [8, 288], strides = [1, 1]} : vector<8x342xbf16> to vector<8x288xbf16>
    %5 = vector.extract_strided_slice %1 {offsets = [0, 2], sizes = [8, 288], strides = [1, 1]} : vector<8x342xbf16> to vector<8x288xbf16>
    %6 = tpu.concatenate %3, %4, %5 in 0 : vector<8x288xbf16>, vector<8x288xbf16>, vector<8x288xbf16> -> vector<24x288xbf16>
    %c0_2 = arith.constant 0 : index
    %c0_3 = arith.constant 0 : index
    %c0_4 = arith.constant 0 : index
    %7 = vector.load %arg2[%c0_2, %c0_3, %c0_4] : memref<3x8x24xbf16, #tpu.memory_space<vmem>>, vector<1x8x24xbf16>
    %8 = vector.shape_cast %7 : vector<1x8x24xbf16> to vector<8x24xbf16>
    %cst_5 = arith.constant dense<0.000000e+00> : vector<8x288xf32>
    %9 = tpu.matmul %8, %6, %cst_5 {dimension_numbers = #tpu.dot_dimension_numbers<[1], [0], [0], [1], [0, 0, 1, 1], [], []>} : vector<8x24xbf16>, vector<24x288xbf16>, vector<8x288xf32> -> vector<8x288xf32>
    %10 = arith.addf %2, %9 : vector<8x288xf32>
    %11 = vector.extract_strided_slice %1 {offsets = [0, 18], sizes = [8, 288], strides = [1, 1]} : vector<8x342xbf16> to vector<8x288xbf16>
    %12 = vector.extract_strided_slice %1 {offsets = [0, 19], sizes = [8, 288], strides = [1, 1]} : vector<8x342xbf16> to vector<8x288xbf16>
    %13 = vector.extract_strided_slice %1 {offsets = [0, 20], sizes = [8, 288], strides = [1, 1]} : vector<8x342xbf16> to vector<8x288xbf16>
    %14 = tpu.concatenate %11, %12, %13 in 0 : vector<8x288xbf16>, vector<8x288xbf16>, vector<8x288xbf16> -> vector<24x288xbf16>
    %c1 = arith.constant 1 : index
    %c0_6 = arith.constant 0 : index
    %c0_7 = arith.constant 0 : index
    %15 = vector.load %arg2[%c1, %c0_6, %c0_7] : memref<3x8x24xbf16, #tpu.memory_space<vmem>>, vector<1x8x24xbf16>
    %16 = vector.shape_cast %15 : vector<1x8x24xbf16> to vector<8x24xbf16>
    %cst_8 = arith.constant dense<0.000000e+00> : vector<8x288xf32>
    %17 = tpu.matmul %16, %14, %cst_8 {dimension_numbers = #tpu.dot_dimension_numbers<[1], [0], [0], [1], [0, 0, 1, 1], [], []>} : vector<8x24xbf16>, vector<24x288xbf16>, vector<8x288xf32> -> vector<8x288xf32>
    %18 = arith.addf %10, %17 : vector<8x288xf32>
    %19 = vector.extract_strided_slice %1 {offsets = [0, 36], sizes = [8, 288], strides = [1, 1]} : vector<8x342xbf16> to vector<8x288xbf16>
    %20 = vector.extract_strided_slice %1 {offsets = [0, 37], sizes = [8, 288], strides = [1, 1]} : vector<8x342xbf16> to vector<8x288xbf16>
    %21 = vector.extract_strided_slice %1 {offsets = [0, 38], sizes = [8, 288], strides = [1, 1]} : vector<8x342xbf16> to vector<8x288xbf16>
    %22 = tpu.concatenate %19, %20, %21 in 0 : vector<8x288xbf16>, vector<8x288xbf16>, vector<8x288xbf16> -> vector<24x288xbf16>
    %c2 = arith.constant 2 : index
    %c0_9 = arith.constant 0 : index
    %c0_10 = arith.constant 0 : index
    %23 = vector.load %arg2[%c2, %c0_9, %c0_10] : memref<3x8x24xbf16, #tpu.memory_space<vmem>>, vector<1x8x24xbf16>
    %24 = vector.shape_cast %23 : vector<1x8x24xbf16> to vector<8x24xbf16>
    %cst_11 = arith.constant dense<0.000000e+00> : vector<8x288xf32>
    %25 = tpu.matmul %24, %22, %cst_11 {dimension_numbers = #tpu.dot_dimension_numbers<[1], [0], [0], [1], [0, 0, 1, 1], [], []>} : vector<8x24xbf16>, vector<24x288xbf16>, vector<8x288xf32> -> vector<8x288xf32>
    %26 = arith.addf %18, %25 : vector<8x288xf32>
    %c0_12 = arith.constant 0 : index
    %c0_13 = arith.constant 0 : index
    %27 = vector.load %arg3[%c0_12, %c0_13] : memref<8x1xf32, #tpu.memory_space<vmem>>, vector<8x1xf32>
    %28 = vector.broadcast %27 : vector<8x1xf32> to vector<8x288xf32>
    %29 = arith.addf %26, %28 : vector<8x288xf32>
    %cst_14 = arith.constant 0.000000e+00 : f32
    %30 = vector.broadcast %cst_14 : f32 to vector<8x288xf32>
    %31 = arith.maximumf %29, %30 : vector<8x288xf32>
    %c0_15 = arith.constant 0 : index
    %c0_16 = arith.constant 0 : index
    %32 = vector.load %arg6[%c0_15, %c0_16] : memref<1x288xf32, #tpu.memory_space<vmem>>, vector<1x288xf32>
    %33 = vector.broadcast %32 : vector<1x288xf32> to vector<8x288xf32>
    %34 = arith.mulf %31, %33 : vector<8x288xf32>
    %35 = arith.truncf %34 : vector<8x288xf32> to vector<8x288xbf16>
    %cst_17 = arith.constant 0.000000e+00 : bf16
    %36 = vector.broadcast %cst_17 : bf16 to vector<8x19xbf16>
    %cst_18 = arith.constant 0.000000e+00 : bf16
    %37 = vector.broadcast %cst_18 : bf16 to vector<8x35xbf16>
    %38 = tpu.concatenate %36, %35, %37 in 1 : vector<8x19xbf16>, vector<8x288xbf16>, vector<8x35xbf16> -> vector<8x342xbf16>
    %cst_19 = arith.constant 0.000000e+00 : f32
    %39 = vector.broadcast %cst_19 : f32 to vector<8x288xf32>
    %40 = vector.extract_strided_slice %38 {offsets = [0, 0], sizes = [8, 288], strides = [1, 1]} : vector<8x342xbf16> to vector<8x288xbf16>
    %41 = vector.extract_strided_slice %38 {offsets = [0, 1], sizes = [8, 288], strides = [1, 1]} : vector<8x342xbf16> to vector<8x288xbf16>
    %42 = vector.extract_strided_slice %38 {offsets = [0, 2], sizes = [8, 288], strides = [1, 1]} : vector<8x342xbf16> to vector<8x288xbf16>
    %43 = tpu.concatenate %40, %41, %42 in 0 : vector<8x288xbf16>, vector<8x288xbf16>, vector<8x288xbf16> -> vector<24x288xbf16>
    %c0_20 = arith.constant 0 : index
    %c0_21 = arith.constant 0 : index
    %c0_22 = arith.constant 0 : index
    %44 = vector.load %arg4[%c0_20, %c0_21, %c0_22] : memref<3x8x24xbf16, #tpu.memory_space<vmem>>, vector<1x8x24xbf16>
    %45 = vector.shape_cast %44 : vector<1x8x24xbf16> to vector<8x24xbf16>
    %cst_23 = arith.constant dense<0.000000e+00> : vector<8x288xf32>
    %46 = tpu.matmul %45, %43, %cst_23 {dimension_numbers = #tpu.dot_dimension_numbers<[1], [0], [0], [1], [0, 0, 1, 1], [], []>} : vector<8x24xbf16>, vector<24x288xbf16>, vector<8x288xf32> -> vector<8x288xf32>
    %47 = arith.addf %39, %46 : vector<8x288xf32>
    %48 = vector.extract_strided_slice %38 {offsets = [0, 18], sizes = [8, 288], strides = [1, 1]} : vector<8x342xbf16> to vector<8x288xbf16>
    %49 = vector.extract_strided_slice %38 {offsets = [0, 19], sizes = [8, 288], strides = [1, 1]} : vector<8x342xbf16> to vector<8x288xbf16>
    %50 = vector.extract_strided_slice %38 {offsets = [0, 20], sizes = [8, 288], strides = [1, 1]} : vector<8x342xbf16> to vector<8x288xbf16>
    %51 = tpu.concatenate %48, %49, %50 in 0 : vector<8x288xbf16>, vector<8x288xbf16>, vector<8x288xbf16> -> vector<24x288xbf16>
    %c1_24 = arith.constant 1 : index
    %c0_25 = arith.constant 0 : index
    %c0_26 = arith.constant 0 : index
    %52 = vector.load %arg4[%c1_24, %c0_25, %c0_26] : memref<3x8x24xbf16, #tpu.memory_space<vmem>>, vector<1x8x24xbf16>
    %53 = vector.shape_cast %52 : vector<1x8x24xbf16> to vector<8x24xbf16>
    %cst_27 = arith.constant dense<0.000000e+00> : vector<8x288xf32>
    %54 = tpu.matmul %53, %51, %cst_27 {dimension_numbers = #tpu.dot_dimension_numbers<[1], [0], [0], [1], [0, 0, 1, 1], [], []>} : vector<8x24xbf16>, vector<24x288xbf16>, vector<8x288xf32> -> vector<8x288xf32>
    %55 = arith.addf %47, %54 : vector<8x288xf32>
    %56 = vector.extract_strided_slice %38 {offsets = [0, 36], sizes = [8, 288], strides = [1, 1]} : vector<8x342xbf16> to vector<8x288xbf16>
    %57 = vector.extract_strided_slice %38 {offsets = [0, 37], sizes = [8, 288], strides = [1, 1]} : vector<8x342xbf16> to vector<8x288xbf16>
    %58 = vector.extract_strided_slice %38 {offsets = [0, 38], sizes = [8, 288], strides = [1, 1]} : vector<8x342xbf16> to vector<8x288xbf16>
    %59 = tpu.concatenate %56, %57, %58 in 0 : vector<8x288xbf16>, vector<8x288xbf16>, vector<8x288xbf16> -> vector<24x288xbf16>
    %c2_28 = arith.constant 2 : index
    %c0_29 = arith.constant 0 : index
    %c0_30 = arith.constant 0 : index
    %60 = vector.load %arg4[%c2_28, %c0_29, %c0_30] : memref<3x8x24xbf16, #tpu.memory_space<vmem>>, vector<1x8x24xbf16>
    %61 = vector.shape_cast %60 : vector<1x8x24xbf16> to vector<8x24xbf16>
    %cst_31 = arith.constant dense<0.000000e+00> : vector<8x288xf32>
    %62 = tpu.matmul %61, %59, %cst_31 {dimension_numbers = #tpu.dot_dimension_numbers<[1], [0], [0], [1], [0, 0, 1, 1], [], []>} : vector<8x24xbf16>, vector<24x288xbf16>, vector<8x288xf32> -> vector<8x288xf32>
    %63 = arith.addf %55, %62 : vector<8x288xf32>
    %c0_32 = arith.constant 0 : index
    %c0_33 = arith.constant 0 : index
    %64 = vector.load %arg5[%c0_32, %c0_33] : memref<8x1xf32, #tpu.memory_space<vmem>>, vector<8x1xf32>
    %65 = vector.broadcast %64 : vector<8x1xf32> to vector<8x288xf32>
    %66 = arith.addf %63, %65 : vector<8x288xf32>
    %cst_34 = arith.constant 0.000000e+00 : f32
    %67 = vector.broadcast %cst_34 : f32 to vector<8x288xf32>
    %68 = arith.maximumf %66, %67 : vector<8x288xf32>
    %cst_35 = arith.constant 0.000000e+00 : f32
    %69 = vector.broadcast %cst_35 : f32 to vector<8x96xf32>
    %70 = tpu.concatenate %68, %69 in 1 : vector<8x288xf32>, vector<8x96xf32> -> vector<8x384xf32>
    %c0_36 = arith.constant 0 : index
    %c0_37 = arith.constant 0 : index
    %c0_38 = arith.constant 0 : index
    %71 = vector.load %arg7[%c0_36, %c0_37, %c0_38] : memref<1x8x384xf32, #tpu.memory_space<vmem>>, vector<1x8x384xf32>
    %72 = vector.shape_cast %71 : vector<1x8x384xf32> to vector<8x384xf32>
    %73 = vector.shape_cast %70 : vector<8x384xf32> to vector<1x8x384xf32>
    tpu.vector_store %arg7[%c0_36, %c0_37, %c0_38], %73 {strides = array<i32>} : memref<1x8x384xf32, #tpu.memory_space<vmem>>, vector<1x8x384xf32>,
    return
  }
  func.func @transform_0(%arg0: i32) -> (i32, i32, i32) {
    %c0_i32 = arith.constant 0 : i32
    %c0_i32_0 = arith.constant 0 : i32
    %c0_i32_1 = arith.constant 0 : i32
    return %arg0, %c0_i32, %c0_i32_0 : i32, i32, i32
  }
  func.func @transform_1(%arg0: i32) -> (i32, i32, i32) {
    %c0_i32 = arith.constant 0 : i32
    %c0_i32_0 = arith.constant 0 : i32
    %c0_i32_1 = arith.constant 0 : i32
    %c0_i32_2 = arith.constant 0 : i32
    return %c0_i32, %c0_i32_0, %c0_i32_1 : i32, i32, i32
  }
  func.func @transform_2(%arg0: i32) -> (i32, i32) {
    %c0_i32 = arith.constant 0 : i32
    %c0_i32_0 = arith.constant 0 : i32
    %c0_i32_1 = arith.constant 0 : i32
    return %c0_i32, %c0_i32_0 : i32, i32
  }
  func.func @transform_3(%arg0: i32) -> (i32, i32, i32) {
    %c0_i32 = arith.constant 0 : i32
    %c0_i32_0 = arith.constant 0 : i32
    %c0_i32_1 = arith.constant 0 : i32
    %c0_i32_2 = arith.constant 0 : i32
    return %c0_i32, %c0_i32_0, %c0_i32_1 : i32, i32, i32
  }
  func.func @transform_4(%arg0: i32) -> (i32, i32) {
    %c0_i32 = arith.constant 0 : i32
    %c0_i32_0 = arith.constant 0 : i32
    %c0_i32_1 = arith.constant 0 : i32
    return %c0_i32, %c0_i32_0 : i32, i32
  }
  func.func @transform_5(%arg0: i32) -> (i32, i32) {
    %c0_i32 = arith.constant 0 : i32
    %c0_i32_0 = arith.constant 0 : i32
    %c0_i32_1 = arith.constant 0 : i32
    return %c0_i32, %c0_i32_0 : i32, i32
  }
  func.func @transform_6(%arg0: i32) -> (i32, i32, i32) {
    %c0_i32 = arith.constant 0 : i32
    %c0_i32_0 = arith.constant 0 : i32
    %c0_i32_1 = arith.constant 0 : i32
    return %arg0, %c0_i32, %c0_i32_0 : i32, i32, i32
  }
}

</mosaic_0001>

<bundles_post_ra>
// kernel: tpu_custom_call.1
= control target key start
LH: loop header
LB: loop body
LE: loop exit
PB: predicated region body
PF: predicated region fallthrough
CT: control target
= control target key end

     0   :  { %s1471_s0 = inlined_call_operand.hbm [shape: bf16[2,8,342], index: 0, kind: input, shape index: {}]   ;;  %s1472_s1 = inlined_call_operand.vmem [shape: bf16[3,8,24], index: 1, kind: input, shape index: {}]   ;;  %s1473_s2 = inlined_call_operand.vmem [shape: f32[8,1], index: 2, kind: input, shape index: {}]   ;;  %s1474_s3 = inlined_call_operand.hbm [shape: bf16[3,8,24], index: 3, kind: input, shape index: {}]   ;;  %s1475_s4 = inlined_call_operand.vmem [shape: f32[8,1], index: 4, kind: input, shape index: {}]   ;;  %s1476_s5 = inlined_call_operand.vmem [shape: f32[1,288], index: 5, kind: input, shape index: {}]   ;;  %s1477_s6 = inlined_call_operand.hbm [shape: f32[2,8,384], index: 6, kind: output, shape index: {}]  }
   0x1   :  { %1479 = sst [smem:[#allocation13_spill]] %s1474_s3 }
   0x2   :  { %11 = vsyncpa [#allocation3], 0 }
   0x3   :  { %13 = vsyncpa [#allocation3 + $0x1], 0 }
   0x4   :  { %14 = vsyncpa [#allocation6], 0 }
   0x5   :  { %15 = vsyncpa [#allocation4], 0 }
   0x6   :  { %17 = vsyncpa [#allocation4 + $0x1], 0  ;;  %s1208_s21 = smov 0   ;;  %s1210_s22 = smov 0  }
   0x7   :  { %s1212_s23 = smov 0   ;;  %s1214_s24 = smov 0  }
   0x8 LB: > { %1480 = sst [smem:[#allocation11_spill]] %s1158_s23  ;;  %s1232_s28 = sadd.s32 4294967295, %s1162_s24   ;;  %s1162_s24 = sphi %s1214_s24, %s1493_s24   ;;  %s1158_s23 = sphi %s1212_s23, %s1490_s23   ;;  %s1154_s22 = sphi %s1210_s22, %s1492_s22   ;;  %s1150_s21 = sphi %s1208_s21, %s1491_s21  }
   0x9   : > { %s1481_s3 = sld [smem:[#allocation13_spill]]  ;;  %p931_p0 = scmp.ge.s32.totalorder %s1162_s24, 1 }
   0xa   : > { %p44_p1 = scmp.eq.s32.totalorder %s1232_s28, 0  ;;  %p185_p2 = scmp.lt.s32.totalorder %s1162_s24, 3 }
   0xb   : > { %s1164_s30 = smov [#allocation5]   ;;  %s1165_s8 = smov 64  }
   0xc   : > { %p1237_p3 = pnand %p931_p0, %p185_p2  ;;  %s204_s7 = sshll.u32 %s1164_s30, 4  ;;  %s205_s7 = int_to_ptr.vmem [resolvable:$true] %s204_s7 }
   0xd   : > { %s1166_s9 = smov 4   ;;  %s930_s10 = sadd.s32 4294967294, %s1162_s24  }
   0xe   : > { %p973_p4 = pneg %p1237_p3  ;;  %s1248_s11 = sadd.s32 1, %s1162_s24  }
   0xf   : > { %s202_s27 = sshll.u32 %s1481_s3, 4  ;;  %s30_s12 = sadd.s32 1, %s1158_s23  ;;  %s203_s27 = int_to_ptr.hbm [resolvable:$true] %s202_s27 }
  0x10   : > { %p974_p6 = pnand %p973_p4, %p44_p1  ;;  %s27_s13 = ssub.s32 %s1162_s24, %s1248_s11 }
  0x11   : > { %p37_p7 = scmp.ne.s32.totalorder %s1158_s23, %s1154_s22  ;;  %p28_p8 = scmp.eq.s32.totalorder %s27_s13, 0 }
  0x12   : > { %976 = dma.hbm_to_vmem [thread:$0]  (!%p974_p6), %s203_s27, 192, %s205_s7, [#allocation6], %s1165_s8, %s1165_s8, %s1166_s9  }
  0x13   : > { %p38_p9 = scmp.eq.s32.totalorder %s1162_s24, 0  ;;  %p43_p10 = scmp.ne.s32.totalorder %s1154_s22, %s1150_s21 }
  0x14   : > { %p172_p11 = scmp.eq.s32.totalorder %s1232_s28, 1  ;;  %p178_p2 = scmp.eq.s32.totalorder %s930_s10, 1 }
  0x15   : > { %s1260_s14 = scalar_select %p28_p8, %s1158_s23, %s30_s12  }
  0x16   : > { %p39_p12 = por %p38_p9, %p37_p7  ;;  %p1264_p13 = por %p44_p1, %p43_p10 }
  0x17   : > { %1483 = sst [smem:[#allocation12_spill]] %s1260_s14  ;;  %p1268_p0 = por %p172_p11, %p37_p7 }
  0x18   : > { %p986_p4 = scmp.lt.s32.totalorder %s1162_s24, 2  ;;  %s224_s17 = sand.u32 1, %s1158_s23  }
  0x19   : > { %p1274_p6 = por %p178_p2, %p43_p10  ;;  %s960_s19 = smul.u32 12, %s224_s17 }
  0x1a   : > { %p1278_p8 = pnand %p986_p4, %p39_p12  ;;  %s961_s25 = smul.u32 12, %s1162_s24 }
  0x1b   : > { %s228_s7 = scalar_lea.vmem [#allocation2], %s960_s19  ;;  %s225_s10 = scalar_lea.sflag [#allocation3], %s224_s17 }
  0x1c   : > { %s233_s30 = scalar_lea.hbm %s1471_s0, %s961_s25  ;;  %s237_s8 = sshll.u32 %s228_s7, 4  ;;  %s238_s8 = int_to_ptr.vmem [resolvable:$true] %s237_s8 }
  0x1d   : > { %s235_s9 = sshll.u32 %s233_s30, 4  ;;  %p1066_p9 = pneg %p1278_p8  ;;  %s236_s9 = int_to_ptr.hbm [resolvable:$true] %s235_s9 }
  0x1e   : > { %s1062_s12 = sshra.s32 %s236_s9, 4  ;;  %s1069_s23 = scalar_lea.hbm %s1471_s0, 24  ;;  %s1063_s12 = int_to_ptr.hbm [resolvable:$true] %s1062_s12 }
  0x1f   : > { %s1064_s13 = scalar_lea.hbm %s1063_s12, 12  ;;  %p1070_p12 = scmp.lt.s32.totalorder %s1063_s12, %s1471_s0 }
  0x20   : > { %p1065_p7 = scmp.ne.s32.totalorder %s1063_s12, %s1064_s13  ;;  %p1071_p2 = scmp.lt.s32.totalorder %s1069_s23, %s1064_s13 }
  0x22   : > { %p1067_p10 = pnand %p1066_p9, %p1065_p7  ;;  %p1072_p4 = por %p1071_p2, %p1070_p12 }
  0x24   : > { %p1068_p11 = pneg %p1067_p10 }
  0x26   : > { %p1073_p5 = pnand %p1072_p4, %p1068_p11 }
  0x28   : > { %1076 = shalt.err (!%p1073_p5)
}
  0x29   : > { %980 = dma.hbm_to_vmem [thread:$0]  (!%p1278_p8), %s236_s9, 192, %s238_s8, %s225_s10  }
  0x2a   : > { %246 = sbr.rel (%p1237_p3) target bundleno = 1008 (0x3f0), region = 44  ;;  %s1299_s17 = sand.u32 (!%p1237_p3), 1, %s1154_s22  }
  0x2b   : > { %s962_s3 = smul.u32 (!%p1237_p3), 12, %s1299_s17  ;;  %s249_s14 = scalar_lea.sflag (!%p1237_p3), [#allocation3], %s1299_s17 }
  0x2d   : > { %s252_s19 = scalar_lea.vmem (!%p1237_p3), [#allocation2], %s962_s3 }
  0x2f   : > { %1137 = dma.done.wait (%p1264_p13), %s249_s14, 192  }
  0x30   : > { %1139 = vsyncadd (%p1264_p13), %s249_s14, 4294967104 }
  0x31   : > { %1141 = dma.done.wait (%p44_p1), [#allocation6], 192  }
  0x32   : > { %1143 = vsyncadd (%p44_p1), [#allocation6], 4294967104  ;;  %v289_v0 = vld [vmem:[%s252_s19 + $0x8] sm:$0xf]  ;;  %v288_v1 = vld [vmem:[%s252_s19] sm:$0xff]  ;;  %s1167_s23 = smov 126  }
  0x33   : > { %v294_v2 = vunpack.c.l.b16 %v289_v0  ;;  %v292_v3 = vunpack.c.l.b16 %v288_v1  ;;  %v293_v4 = vunpack.c.h.b16 %v288_v1  ;;  %s1168_s29 = smov 127   ;;  %vm304_vm0 = vcmask 1039360   ;;  %s1169_s15 = smov 110   ;;  %v329_v22 = vld [vmem:[%s1472_s1] sm:$0xf] }
  0x34   : > { %vm313_vm1 = vcmask 1031168   ;;  %vm316_vm2 = vcmask 1043456   ;;  %s1170_s20 = smov 92   ;;  %vm355_vm3 = vcmask 195584   ;;  %vm347_vm4 = vcmask 900096   ;;  %v534_v40 = vld [vmem:[%s1473_s2] sm:$0xff] }
  0x35   : > { %v297_v5 = vpack.c.b16 %v294_v2, %v294_v2  ;;  %v295_v6 = vpack.c.b16 %v292_v3, %v292_v3  ;;  %v296_v7 = vpack.c.b16 %v293_v4, %v293_v4  ;;  %v937_v37 = vld [vmem:[%s1472_s1 + $0x4] sm:$0xf]  ;;  %vm472_vm5 = vcmask 752640   ;;  %v944_v54 = vld [vmem:[%s1472_s1 + $0x8] sm:$0xf]  ;;  %s1172_s3 = smov 19  }
  0x36   : > { %v1171_v39 = vmov 0   ;;  %vm573_vm6 = vcmask 154624   ;;  %vm580_vm7 = vcmask 416768   ;;  %vm828_vm8 = vcmask 261120   ;;  %s834_s8 = scalar_lea.sflag [#allocation4], %s1299_s17  ;;  %s1112_s26 = scalar_lea.hbm %s1477_s6, 48 }
  0x37   : > { %311 = vrot.lane.b32.xlu1 %v297_v5, %s1167_s23  ;;  %307 = vrot.lane.b32.xlu0 %v295_v6, %s1167_s23 }
  0x38   : > { %300 = vrot.lane.b32.xlu2 %v296_v7, %s1168_s29  ;;  %1030 = vset.pattern.permute.xlu0 %v1171_v39 }
  0x39   : > { %1031 = vset.pattern.permute.xlu2 %v1171_v39 }
  0x3f   : > { %298 = vrot.lane.b32.xlu1 %v295_v6, %s1168_s29  ;;  %309 = vrot.lane.b32.xlu0 %v296_v7, %s1167_s23 }
  0x40   : > { %302 = vrot.lane.b32.xlu2 %v297_v5, %s1168_s29 }
  0x92   : > { %v301_v10 = vpop.permute.xlu2 %300 }
  0x9a   : > { %v303_v18 = vpop.permute.xlu2 %302 }
  0x9b   : > { %v306_v19 = vsel %vm304_vm0, %v301_v10, %v303_v18  ;;  %v327_v20 = vsel %vm316_vm2, %v297_v5, %v303_v18 }
  0x9c   : > { %v323_v21 = vsel %vm316_vm2, %v296_v7, %v306_v19 }
  0xa9   : > { %v1317_v8 = vpop.permute.xlu1 %311  ;;  %v308_v9 = vpop.permute.xlu0 %307 }
  0xaa   : > { %v417_v42 = vsel %vm316_vm2, %v1317_v8, 0 }
  0xb1   : > { %v299_v11 = vpop.permute.xlu1 %298  ;;  %v310_v12 = vpop.permute.xlu0 %309 }
  0xb2   : > { %v305_v13 = vsel %vm304_vm0, %v299_v11, %v301_v10  ;;  %v315_v14 = vsel %vm313_vm1, %v310_v12, %v1317_v8  ;;  %v314_v15 = vsel %vm313_vm1, %v308_v9, %v310_v12 }
  0xb3   : > { %343 = vrot.lane.b32.xlu1 %v315_v14, %s1169_s15  ;;  %341 = vrot.lane.b32.xlu0 %v314_v15, %s1169_s15  ;;  %v319_v16 = vsel %vm316_vm2, %v295_v6, %v305_v13  ;;  %v411_v17 = vsel %vm316_vm2, %v314_v15, 0  ;;  %v414_v36 = vsel %vm316_vm2, %v315_v14, 0  ;;  %v546_v6 = vld [vmem:[%s1476_s5] sm:$0x7] }
  0xb4   : > { %335 = vrot.lane.b32.xlu2 %v319_v16, %s1169_s15  ;;  %425 = vmatpush.bf16.msra.mxu3 %v411_v17  ;;  %v549_v11 = vperm.slane %v546_v6, 1  ;;  %v548_v13 = vperm.slane %v546_v6, 0 }
  0xb8   : > { %426 = vmatpush.bf16.msra.mxu3 %v319_v16 }
  0xbb   : > { %345 = vrot.lane.b32.xlu1 %v1317_v8, %s1169_s15  ;;  %337 = vrot.lane.b32.xlu0 %v323_v21, %s1169_s15 }
  0xbc   : > { %339 = vrot.lane.b32.xlu2 %v327_v20, %s1169_s15  ;;  %941 = vmatmul.msk.bf16.vlgmr.msra.gmra.mxu3 %vm355_vm3, %v329_v22 }
  0xc3   : > { %468 = vrot.lane.b32.xlu1 %v315_v14, %s1170_s20  ;;  %466 = vrot.lane.b32.xlu0 %v314_v15, %s1170_s20 }
  0xc4   : > { %470 = vrot.lane.b32.xlu2 %v1317_v8, %s1170_s20 }
  0xcb   : > { %462 = vrot.lane.b32.xlu1 %v323_v21, %s1170_s20  ;;  %460 = vrot.lane.b32.xlu0 %v319_v16, %s1170_s20 }
  0xcc   : > { %464 = vrot.lane.b32.xlu2 %v327_v20, %s1170_s20 }
  0xd3   : > { %537 = vperm.xlu0 %1030, %v534_v40  }
 0x10e   : > { %v336_v23 = vpop.permute.xlu2 %335 }
 0x116   : > { %v340_v24 = vpop.permute.xlu2 %339 }
 0x11e   : > { %v471_v31 = vpop.permute.xlu2 %470 }
 0x11f   : > { %v490_v41 = vsel %vm316_vm2, %v471_v31, 0 }
 0x125   : > { %v344_v25 = vpop.permute.xlu1 %343  ;;  %v342_v26 = vpop.permute.xlu0 %341 }
 0x126   : > { %v350_v27 = vsel %vm347_vm4, %v342_v26, %v344_v25  ;;  %v465_v49 = vpop.permute.xlu2 %464 }
 0x127   : > { %v360_v28 = vsel %vm316_vm2, %v350_v27, 0 }
 0x128   : > { %374 = vmatpush.bf16.msra.mxu0 %v360_v28 }
 0x12d   : > { %v346_v29 = vpop.permute.xlu1 %345  ;;  %v338_v30 = vpop.permute.xlu0 %337 }
 0x12e   : > { %v348_v32 = vsel %vm347_vm4, %v336_v23, %v338_v30  ;;  %v366_v33 = vsel %vm316_vm2, %v346_v29, 0  ;;  %v351_v34 = vsel %vm347_vm4, %v344_v25, %v346_v29  ;;  %v349_v38 = vsel %vm347_vm4, %v338_v30, %v340_v24 }
 0x12f   : > { %375 = vmatpush.bf16.msra.mxu0 %v348_v32  ;;  %400 = vmatpush.bf16.msra.mxu2 %v366_v33  ;;  %v363_v35 = vsel %vm316_vm2, %v351_v34, 0  ;;  %v550_v25 = vperm.slane %v546_v6, 2 }
 0x130   : > { %387 = vmatpush.bf16.msra.mxu1 %v363_v35 }
 0x132   : > { %938 = vmatmul.msk.bf16.vlgmr.msra.gmra.mxu0 %vm355_vm3, %v937_v37 }
 0x133   : > { %438 = vmatpush.bf16.msrb.mxu0 %v414_v36  ;;  %401 = vmatpush.bf16.msra.mxu2 %v340_v24 }
 0x134   : > { %388 = vmatpush.bf16.msra.mxu1 %v349_v38 }
 0x135   : > { %v469_v43 = vpop.permute.xlu1 %468  ;;  %v467_v44 = vpop.permute.xlu0 %466 }
 0x136   : > { %940 = vmatmul.msk.bf16.vlgmr.msra.gmra.mxu2 %vm355_vm3, %v937_v37  ;;  %v475_v45 = vsel %vm472_vm5, %v467_v44, %v469_v43  ;;  %v476_v46 = vsel %vm472_vm5, %v469_v43, %v471_v31 }
 0x137   : > { %439 = vmatpush.bf16.msrb.mxu0 %v323_v21  ;;  %939 = vmatmul.msk.bf16.vlgmr.msra.gmra.mxu1 %vm355_vm3, %v937_v37  ;;  %v484_v47 = vsel %vm316_vm2, %v475_v45, 0  ;;  %v487_v48 = vsel %vm316_vm2, %v476_v46, 0 }
 0x138   : > { %451 = vmatpush.bf16.msrb.mxu1 %v417_v42  ;;  %498 = vmatpush.bf16.msrb.mxu2 %v484_v47 }
 0x139   : > { %511 = vmatpush.bf16.msrb.mxu3 %v487_v48 }
 0x13b   : > { %524 = vmatpush.bf16.msra.mxu0 %v490_v41 }
 0x13c   : > { %452 = vmatpush.bf16.msrb.mxu1 %v327_v20 }
 0x13d   : > { %v463_v50 = vpop.permute.xlu1 %462  ;;  %v461_v51 = vpop.permute.xlu0 %460 }
 0x13e   : > { %v473_v52 = vsel %vm472_vm5, %v461_v51, %v463_v50  ;;  %v474_v53 = vsel %vm472_vm5, %v463_v50, %v465_v49 }
 0x13f   : > { %525 = vmatpush.bf16.msra.mxu0 %v465_v49  ;;  %499 = vmatpush.bf16.msrb.mxu2 %v473_v52  ;;  %v428_v55 = vpop.f32.mrf.mxu3 }
 0x140   : > { %512 = vmatpush.bf16.msrb.mxu3 %v474_v53 }
 0x142   : > { %942 = vmatmul.msk.bf16.vlgmr.msrb.gmra.mxu0 %vm355_vm3, %v329_v22 }
 0x143   : > { %946 = vmatmul.msk.bf16.vlgmr.msrb.gmra.mxu3 %vm355_vm3, %v944_v54 }
 0x145   : > { %v538_v3 = vpop.permute.xlu0 %537 }
 0x146   : > { %945 = vmatmul.msk.bf16.vlgmr.msrb.gmra.mxu2 %vm355_vm3, %v944_v54 }
 0x147   : > { %943 = vmatmul.msk.bf16.vlgmr.msrb.gmra.mxu1 %vm355_vm3, %v329_v22  ;;  %v430_v56 = vpop.f32.mrf.mxu3 }
 0x152   : > { %947 = vmatmul.msk.bf16.vlgmr.msra.gmra.mxu0 %vm355_vm3, %v944_v54 }
 0x1af   : > { %v377_v57 = vpop.f32.mrf.mxu0 }
 0x1b0   : > { %v429_v7 = vadd.f32 %v428_v55, %v377_v57 }
 0x1b4   : > { %v390_v58 = vpop.f32.mrf.mxu1 }
 0x1b7   : > { %v379_v59 = vpop.f32.mrf.mxu0 }
 0x1b9   : > { %v403_v60 = vpop.f32.mrf.mxu2 }
 0x1bc   : > { %v392_v61 = vpop.f32.mrf.mxu1 }
 0x1bd   : > { %v614_v61 = vld [vmem:[#allocation5] sm:$0xf] }
 0x1bf   : > { %v441_v62 = vpop.f32.mrf.mxu0 }
 0x1c0   : > { %v442_v0 = vadd.f32 %v441_v62, %v390_v58 }
 0x1c1   : > { %v405_v63 = vpop.f32.mrf.mxu2 }
 0x1c4   : > { %v454_v1 = vpop.f32.mrf.mxu1 }
 0x1c5   : > { %v455_v17 = vadd.f32 %v454_v1, %v403_v60 }
 0x1c6   : > { %v514_v2 = vpop.f32.mrf.mxu3 }
 0x1c7   : > { %v532_v4 = vadd.f32 %v514_v2, %v442_v0  ;;  %v443_v5 = vpop.f32.mrf.mxu0 }
 0x1c9   : > { %v541_v8 = vadd.f32 %v538_v3, %v532_v4  ;;  %v501_v9 = vpop.f32.mrf.mxu2 }
 0x1ca   : > { %v531_v10 = vadd.f32 %v501_v9, %v429_v7 }
 0x1cb   : > { %v544_v12 = vmax.f32 %v541_v8, 0.0 }
 0x1cc   : > { %v540_v14 = vadd.f32 %v538_v3, %v531_v10  ;;  %v456_v15 = vpop.f32.mrf.mxu1  ;;  %v616_v10 = vld [vmem:[#allocation5 + $0x4] sm:$0xf] }
 0x1cd   : > { %v555_v19 = vmul.f32 %v549_v11, %v544_v12  ;;  %v816_v11 = vld [vmem:[%s1475_s4] sm:$0xff] }
 0x1ce   : > { %v516_v16 = vpop.f32.mrf.mxu3  ;;  %v543_v18 = vmax.f32 %v540_v14, 0.0 }
 0x1cf   : > { %v527_v20 = vpop.f32.mrf.mxu0 }
 0x1d0   : > { %v554_v21 = vmul.f32 %v548_v13, %v543_v18  ;;  %v533_v22 = vadd.f32 %v527_v20, %v455_v17 }
 0x1d1   : > { %v503_v23 = vpop.f32.mrf.mxu2 }
 0x1d2   : > { %v542_v24 = vadd.f32 %v538_v3, %v533_v22  ;;  %v557_v26 = vpack.c.bf16 %v555_v19, %v554_v21 }
 0x1d4   : > { %v545_v27 = vmax.f32 %v542_v24, 0.0  ;;  %v562_v28 = vunpack.c.h.b16 %v557_v26  ;;  %v561_v34 = vunpack.c.l.b16 %v557_v26 }
 0x1d6   : > { %v556_v29 = vmul.f32 %v550_v25, %v545_v27  ;;  %v565_v30 = vpack.c.b16 %v562_v28, %v562_v28  ;;  %v564_v36 = vpack.c.b16 %v561_v34, %v561_v34  ;;  %v742_v28 = vld [vmem:[#allocation5 + $0x8] sm:$0xf] }
 0x1d7   : > { %v529_v31 = vpop.f32.mrf.mxu0 }
 0x1d8   : > { %569 = vrot.lane.b32.xlu1 %v565_v30, %s1172_s3  ;;  %v558_v32 = vpack.c.bf16 %v556_v29, %v556_v29 }
 0x1da   : > { %v563_v33 = vunpack.c.l.b16 %v558_v32 }
 0x1dc   : > { %v566_v35 = vpack.c.b16 %v563_v33, %v563_v33 }
 0x1de   : > { %571 = vrot.lane.b32.xlu2 %v566_v35, %s1172_s3 }
 0x1e0   : > { %567 = vrot.lane.b32.xlu1 %v564_v36, %s1172_s3 }
 0x238   : > { %v572_v37 = vpop.permute.xlu2 %571 }
 0x24a   : > { %v570_v38 = vpop.permute.xlu1 %569 }
 0x24b   : > { %v575_v39 = vsel %vm573_vm6, %v570_v38, %v572_v37 }
 0x24c   : > { %v582_v40 = vsel %vm580_vm7, %v575_v39, 0 }
 0x24d   : > { %600 = vrot.lane.b32.xlu1 %v582_v40, %s1167_s23  ;;  %v587_v44 = vrot.slane %v582_v40, 4 }
 0x252   : > { %v568_v41 = vpop.permute.xlu1 %567 }
 0x253   : > { %v579_v42 = vsel %vm573_vm6, 0, %v568_v41  ;;  %v574_v43 = vsel %vm573_vm6, %v568_v41, %v570_v38 }
 0x254   : > { %596 = vrot.lane.b32.xlu2 %v579_v42, %s1167_s23  ;;  %598 = vrot.lane.b32.xlu0 %v574_v43, %s1167_s23  ;;  %v585_v45 = vrot.slane %v579_v42, 4  ;;  %v586_v46 = vrot.slane %v574_v43, 4  ;;  %s963_s23 = smul.u32 24, %s1299_s17 }
 0x255   : > { %592 = vrot.lane.b32.xlu1 %v587_v44, %s1168_s29 }
 0x25c   : > { %588 = vrot.lane.b32.xlu2 %v585_v45, %s1168_s29  ;;  %590 = vrot.lane.b32.xlu0 %v586_v46, %s1168_s29  ;;  %s964_s29 = smul.u32 24, %s1232_s28 }
 0x25e   : > { %s845_s30 = scalar_lea.hbm %s1477_s6, %s964_s29 }
 0x25f   : > { %s849_s28 = sshll.u32 %s845_s30, 4  ;;  %s850_s28 = int_to_ptr.hbm [resolvable:$true] %s849_s28 }
 0x260   : > { %s1106_s9 = sshra.s32 %s850_s28, 4  ;;  %s1107_s9 = int_to_ptr.hbm [resolvable:$true] %s1106_s9 }
 0x261   : > { %s1108_s10 = scalar_lea.hbm %s1107_s9, 24  ;;  %p1113_p13 = scmp.lt.s32.totalorder %s1107_s9, %s1477_s6 }
 0x262   : > { %p1109_p1 = scmp.ne.s32.totalorder %s1107_s9, %s1108_s10  ;;  %p1114_p8 = scmp.lt.s32.totalorder %s1112_s26, %s1108_s10 }
 0x264   : > { %p1110_p3 = pnand %p1109_p1, %p1268_p0  ;;  %p1115_p7 = por %p1114_p8, %p1113_p13 }
 0x266   : > { %p1111_p5 = pneg %p1110_p3 }
 0x268   : > { %p1116_p9 = pnand %p1115_p7, %p1111_p5 }
 0x2ae   : > { %v597_v47 = vpop.permute.xlu2 %596 }
 0x2b6   : > { %v589_v53 = vpop.permute.xlu2 %588 }
 0x2bf   : > { %v601_v48 = vpop.permute.xlu1 %600 }
 0x2c0   : > { %v700_v18 = vsel %vm316_vm2, %v601_v48, 0 }
 0x2c6   : > { %v599_v49 = vpop.permute.xlu0 %598 }
 0x2c7   : > { %v602_v50 = vsel %vm313_vm1, %v597_v47, %v599_v49  ;;  %v603_v51 = vsel %vm313_vm1, %v599_v49, %v601_v48  ;;  %v593_v54 = vpop.permute.xlu1 %592 }
 0x2c8   : > { %626 = vrot.lane.b32.xlu2 %v602_v50, %s1169_s15  ;;  %628 = vrot.lane.b32.xlu0 %v603_v51, %s1169_s15  ;;  %v694_v52 = vsel %vm316_vm2, %v602_v50, 0  ;;  %v612_v60 = vsel %vm316_vm2, %v582_v40, %v593_v54  ;;  %v697_v9 = vsel %vm316_vm2, %v603_v51, 0 }
 0x2c9   : > { %708 = vmatpush.bf16.msrb.mxu0 %v694_v52 }
 0x2ce   : > { %v591_v55 = vpop.permute.xlu0 %590 }
 0x2cf   : > { %v594_v56 = vsel %vm304_vm0, %v589_v53, %v591_v55  ;;  %v595_v57 = vsel %vm304_vm0, %v591_v55, %v593_v54 }
 0x2d0   : > { %630 = vrot.lane.b32.xlu0 %v601_v48, %s1169_s15  ;;  %v605_v58 = vsel %vm316_vm2, %v579_v42, %v594_v56  ;;  %v609_v59 = vsel %vm316_vm2, %v574_v43, %v595_v57 }
 0x2d1   : > { %620 = vrot.lane.b32.xlu1 %v605_v58, %s1169_s15  ;;  %709 = vmatpush.bf16.msrb.mxu0 %v605_v58 }
 0x2d2   : > { %622 = vrot.lane.b32.xlu2 %v609_v59, %s1169_s15 }
 0x2d4   : > { %951 = vmatmul.msk.bf16.vlgmr.msrb.gmra.mxu0 %vm355_vm3, %v614_v61 }
 0x2d8   : > { %751 = vrot.lane.b32.xlu0 %v603_v51, %s1170_s20 }
 0x2d9   : > { %624 = vrot.lane.b32.xlu1 %v612_v60, %s1169_s15  ;;  %s286_s15 = scalar_lea.vmem [#allocation7], %s963_s23 }
 0x2da   : > { %749 = vrot.lane.b32.xlu2 %v602_v50, %s1170_s20  ;;  %s847_s7 = sshll.u32 %s286_s15, 4  ;;  %s848_s7 = int_to_ptr.vmem [resolvable:$true] %s847_s7 }
 0x2e0   : > { %753 = vrot.lane.b32.xlu0 %v601_v48, %s1170_s20 }
 0x2e1   : > { %743 = vrot.lane.b32.xlu1 %v605_v58, %s1170_s20 }
 0x2e2   : > { %745 = vrot.lane.b32.xlu2 %v609_v59, %s1170_s20 }
 0x2e9   : > { %747 = vrot.lane.b32.xlu1 %v612_v60, %s1170_s20 }
 0x2ea   : > { %819 = vperm.xlu2 %1031, %v816_v11  }
 0x322   : > { %v627_v62 = vpop.permute.xlu2 %626 }
 0x32c   : > { %v623_v2 = vpop.permute.xlu2 %622 }
 0x334   : > { %v750_v12 = vpop.permute.xlu2 %749 }
 0x33a   : > { %v629_v63 = vpop.permute.xlu0 %628 }
 0x33b   : > { %v634_v0 = vsel %vm347_vm4, %v627_v62, %v629_v63 }
 0x33c   : > { %v643_v1 = vsel %vm316_vm2, %v634_v0, 0  ;;  %v746_v20 = vpop.permute.xlu2 %745 }
 0x33d   : > { %657 = vmatpush.bf16.msra.mxu1 %v643_v1 }
 0x342   : > { %v631_v3 = vpop.permute.xlu0 %630 }
 0x343   : > { %v635_v4 = vsel %vm347_vm4, %v629_v63, %v631_v3  ;;  %v649_v5 = vsel %vm316_vm2, %v631_v3, 0  ;;  %v621_v6 = vpop.permute.xlu1 %620 }
 0x344   : > { %v646_v7 = vsel %vm316_vm2, %v635_v4, 0  ;;  %683 = vmatpush.bf16.msra.mxu3 %v649_v5  ;;  %v632_v8 = vsel %vm347_vm4, %v621_v6, %v623_v2  ;;  %v820_v39 = vpop.permute.xlu2 %819 }
 0x345   : > { %658 = vmatpush.bf16.msra.mxu1 %v632_v8  ;;  %670 = vmatpush.bf16.msra.mxu2 %v646_v7 }
 0x348   : > { %948 = vmatmul.msk.bf16.vlgmr.msra.gmra.mxu1 %vm355_vm3, %v616_v10 }
 0x349   : > { %721 = vmatpush.bf16.msrb.mxu1 %v697_v9 }
 0x34a   : > { %v752_v13 = vpop.permute.xlu0 %751 }
 0x34b   : > { %v757_v14 = vsel %vm472_vm5, %v750_v12, %v752_v13  ;;  %v625_v15 = vpop.permute.xlu1 %624 }
 0x34c   : > { %v766_v16 = vsel %vm316_vm2, %v757_v14, 0  ;;  %684 = vmatpush.bf16.msra.mxu3 %v625_v15  ;;  %v633_v17 = vsel %vm347_vm4, %v623_v2, %v625_v15 }
 0x34d   : > { %722 = vmatpush.bf16.msrb.mxu1 %v609_v59  ;;  %671 = vmatpush.bf16.msra.mxu2 %v633_v17 }
 0x34f   : > { %950 = vmatmul.msk.bf16.vlgmr.msra.gmra.mxu3 %vm355_vm3, %v616_v10 }
 0x350   : > { %780 = vmatpush.bf16.msrb.mxu3 %v766_v16  ;;  %949 = vmatmul.msk.bf16.vlgmr.msra.gmra.mxu2 %vm355_vm3, %v616_v10 }
 0x351   : > { %734 = vmatpush.bf16.msrb.mxu2 %v700_v18  ;;  %v711_v29 = vpop.f32.mrf.mxu0 }
 0x352   : > { %v754_v19 = vpop.permute.xlu0 %753 }
 0x353   : > { %v758_v21 = vsel %vm472_vm5, %v752_v13, %v754_v19  ;;  %v772_v22 = vsel %vm316_vm2, %v754_v19, 0  ;;  %v744_v23 = vpop.permute.xlu1 %743 }
 0x354   : > { %v769_v24 = vsel %vm316_vm2, %v758_v21, 0  ;;  %806 = vmatpush.bf16.msra.mxu1 %v772_v22  ;;  %v755_v25 = vsel %vm472_vm5, %v744_v23, %v746_v20 }
 0x355   : > { %735 = vmatpush.bf16.msrb.mxu2 %v612_v60  ;;  %781 = vmatpush.bf16.msrb.mxu3 %v755_v25 }
 0x356   : > { %793 = vmatpush.bf16.msra.mxu0 %v769_v24 }
 0x358   : > { %952 = vmatmul.msk.bf16.vlgmr.msrb.gmra.mxu1 %vm355_vm3, %v614_v61 }
 0x359   : > { %v713_v30 = vpop.f32.mrf.mxu0 }
 0x35b   : > { %v748_v26 = vpop.permute.xlu1 %747 }
 0x35c   : > { %807 = vmatpush.bf16.msra.mxu1 %v748_v26  ;;  %v756_v27 = vsel %vm472_vm5, %v746_v20, %v748_v26 }
 0x35d   : > { %794 = vmatpush.bf16.msra.mxu0 %v756_v27 }
 0x35f   : > { %954 = vmatmul.msk.bf16.vlgmr.msrb.gmra.mxu3 %vm355_vm3, %v742_v28 }
 0x360   : > { %953 = vmatmul.msk.bf16.vlgmr.msrb.gmra.mxu2 %vm355_vm3, %v614_v61  ;;  %955 = vmatmul.msk.bf16.vlgmr.msra.gmra.mxu0 %vm355_vm3, %v742_v28 }
 0x368   : > { %956 = vmatmul.msk.bf16.vlgmr.msra.gmra.mxu1 %vm355_vm3, %v742_v28 }
 0x3c5   : > { %v660_v31 = vpop.f32.mrf.mxu1 }
 0x3c6   : > { %v712_v44 = vadd.f32 %v711_v29, %v660_v31 }
 0x3cd   : > { %v662_v32 = vpop.f32.mrf.mxu1 }
 0x3d2   : > { %v686_v33 = vpop.f32.mrf.mxu3 }
 0x3d3   : > { %v673_v34 = vpop.f32.mrf.mxu2 }
 0x3d5   : > { %v724_v35 = vpop.f32.mrf.mxu1 }
 0x3d6   : > { %v725_v38 = vadd.f32 %v724_v35, %v673_v34 }
 0x3da   : > { %v688_v36 = vpop.f32.mrf.mxu3 }
 0x3db   : > { %v675_v37 = vpop.f32.mrf.mxu2 }
 0x3dd   : > { %v726_v40 = vpop.f32.mrf.mxu1  ;;  %v796_v41 = vpop.f32.mrf.mxu0 }
 0x3de   : > { %v814_v42 = vadd.f32 %v796_v41, %v725_v38 }
 0x3e0   : > { %v823_v43 = vadd.f32 %v820_v39, %v814_v42 }
 0x3e2   : > { %v826_v45 = vmax.f32 %v823_v43, 0.0  ;;  %v783_v46 = vpop.f32.mrf.mxu3 }
 0x3e3   : > { %v813_v47 = vadd.f32 %v783_v46, %v712_v44  ;;  %v737_v48 = vpop.f32.mrf.mxu2 }
 0x3e4   : > { %831 = vst [vmem:[%s286_s15 + $0x8] sm:$0xff] %v826_v45  ;;  %v738_v49 = vadd.f32 %v737_v48, %v686_v33 }
 0x3e5   : > { %v822_v50 = vadd.f32 %v820_v39, %v813_v47  ;;  %v809_v51 = vpop.f32.mrf.mxu1  ;;  %v798_v52 = vpop.f32.mrf.mxu0 }
 0x3e6   : > { %v815_v53 = vadd.f32 %v809_v51, %v738_v49 }
 0x3e7   : > { %v825_v54 = vmax.f32 %v822_v50, 0.0 }
 0x3e8   : > { %v824_v55 = vadd.f32 %v820_v39, %v815_v53 }
 0x3e9   : > { %830 = vst [vmem:[%s286_s15] sm:$0xff] %v825_v54 }
 0x3ea   : > { %v827_v56 = vmax.f32 %v824_v55, 0.0  ;;  %v785_v57 = vpop.f32.mrf.mxu3 }
 0x3eb   : > { %v739_v58 = vpop.f32.mrf.mxu2 }
 0x3ec   : > { %v829_v59 = vsel %vm828_vm8, %v827_v56, 0.0 }
 0x3ed   : > { %832 = vst [vmem:[%s286_s15 + $0x10] sm:$0xff] %v829_v59  ;;  %v811_v60 = vpop.f32.mrf.mxu1 }
 0x3ee   : > { %1119 = shalt.err (!%p1116_p9)
}
 0x3ef   : > { %971 = dma.vmem_to_hbm [thread:$0]  (%p1268_p0), %s848_s7, 384, %s850_s28, %s834_s8  }
 0x3f0 PF: > { %s861_s17 = sand.u32 1, %s1150_s21   ;;  %p1488_p10 = scmp.ge.s32.totalorder %s1162_s24, 2 }
 0x3f1   : > { %s862_s14 = scalar_lea.sflag [#allocation4], %s861_s17 }
 0x3f2   : > { %p982_p11 = pnand %p1488_p10, %p1274_p6 }
 0x3f4   : > { %p983_p12 = pneg %p982_p11 }
 0x3f6   : > { %1145 = dma.done.wait (%p983_p12), %s862_s14, 384  }
 0x3f7   : > { %1147 = vsyncadd (%p983_p12), %s862_s14, 4294966912  ;;  %s1489_s19 = sld [smem:[#allocation11_spill]]  ;;  %p20_p2 = scmp.ge.s32.totalorder %s1248_s11, 4  }
 0x3f8   : > { %s1490_s23 = sld [smem:[#allocation12_spill]]  ;;  %s1491_s21 = smov %s1154_s22 }
 0x3f9   : > { %s1493_s24 = smov %s1248_s11  ;;  %22 = sbr.rel (!%p20_p2) target bundleno = 8 (0x8), region = 97 }
 0x3fd   : > { %s1492_s22 = smov %s1489_s19 }
 0x3fe   :  { %868 = vsyncpa [#allocation3], 1 }
 0x3ff   :  { %870 = vsyncpa [#allocation3 + $0x1], 1 }
 0x400   :  { %871 = vsyncpa [#allocation6], 1 }
 0x401   :  { %872 = vsyncpa [#allocation4], 1 }
 0x402   :  { %874 = vsyncpa [#allocation4 + $0x1], 1 }

</bundles_post_ra>
